<compile_context>
chip_gen: v7x
topology: tpu7x:2x2x1
jax: 0.10.0
libtpu: 0.0.40
codegen_flags: <defaults>
</compile_context>

<pallas_src>
import functools

import jax
import jax.numpy as jnp
from jax import lax
from jax.experimental import pallas as pl
from jax.experimental.pallas import tpu as pltpu


def _encoder_kernel(x_ref, wx_ref, bx_ref, whh_ref, out_ref, gx_ref, *,
                    obs_len, h_dim):
    """Single-invocation LSTM encoder; everything resident in VMEM.

    x_ref  : (obs_len, batch, 2)     f32
    wx_ref : (2, 4h)                 f32  fused (embedding @ input-proj), gates [i,f,o,g]
    bx_ref : (1, 4h)                 f32  fused bias, gates [i,f,o,g]
    whh_ref: (h, 4h)                 bf16 recurrent weights, gates [i,f,o,g]
    out_ref: (1, batch, h)           f32  final hidden state
    gx_ref : (obs_len, batch, 4h)    f32  VMEM scratch (precomputed input gates)
    """
    batch = x_ref.shape[1]
    h4 = 4 * h_dim

    # ---- Prologue: one-shot input projection for ALL time steps -> VMEM scratch.
    # Off the serial critical path; one tiny K=2 MXU matmul instead of obs_len
    # separate broadcast chains held live in vregs.
    x_all = x_ref[...].reshape(obs_len * batch, 2)
    gx_all = jnp.dot(x_all, wx_ref[...],
                     preferred_element_type=jnp.float32) + bx_ref[...]
    gx_ref[...] = gx_all.reshape(obs_len, batch, h4)

    whh = whh_ref[...]                                  # (h, 4h) bf16, loaded once

    h0 = jnp.zeros((batch, h_dim), jnp.float32)
    c0 = jnp.zeros((batch, h_dim), jnp.float32)

    def step(t, carry):
        h, c = carry
        # One (batch, h) @ (h, 4h) bf16 matmul per step; f32 accumulation.
        gates = gx_ref[t] + jnp.dot(h.astype(jnp.bfloat16), whh,
                                    preferred_element_type=jnp.float32)  # (B, 4h)
        # Full-tile EUP ops: sigmoid over all 4h lanes, tanh over the trailing
        # 128-lane tile containing g (gate order [i, f, o, g]).  64-lane halves
        # are then picked from full-tile results -- no cross-tile 192-wide slice.
        sig = jax.nn.sigmoid(gates)                     # [sig(i)|sig(f)|sig(o)|junk]
        tnh = jnp.tanh(gates[:, 2 * h_dim:])            # [junk | tanh(g)]
        i_g = sig[:, 0:h_dim]
        f_g = sig[:, h_dim:2 * h_dim]
        o_g = sig[:, 2 * h_dim:3 * h_dim]
        g_g = tnh[:, h_dim:]
        c_new = f_g * c + i_g * g_g
        h_new = o_g * jnp.tanh(c_new)
        return (h_new, c_new)

    h, _ = lax.fori_loop(0, obs_len, step, (h0, c0), unroll=True)
    out_ref[0] = h


def _reorder_gate_cols(a):
    """Permute gate blocks along the last (4h) axis: [i, f, g, o] -> [i, f, o, g]."""
    i, f, g, o = jnp.split(a, 4, axis=-1)
    return jnp.concatenate([i, f, o, g], axis=-1)


def encoder_forward(obs_traj, params, *, embedding_dim, h_dim, num_layers=1):
    """obs_traj: (obs_len, batch, 2) f32 -> final_h: (num_layers, batch, h_dim)."""
    assert num_layers == 1  # TODO(synk): multi-layer LSTM stacking not implemented
    obs_len, batch, two = obs_traj.shape
    assert two == 2
    del embedding_dim  # folded away by the exact algebraic fusion below

    # Exact fusion of the spatial-embedding Linear into the LSTM input projection
    # (valid because SGAN's Encoder has no nonlinearity between them):
    #   gates_x = x @ (W_emb^T W_ih^T) + (W_ih b_emb + b_ih + b_hh)
    w_x = params["w_emb"].T @ params["w_ih"].T                        # (2, 4h)
    b_x = (params["w_ih"] @ params["b_emb"]
           + params["b_ih"] + params["b_hh"]).reshape(1, 4 * h_dim)   # (1, 4h)
    w_hh_t = params["w_hh"].T                                         # (h, 4h)

    # Gate-column permutation [i,f,g,o] -> [i,f,o,g] (consistently on W_x, W_hh^T,
    # bias; the kernel's slicing assumes this order so g sits in the last tile).
    w_x = _reorder_gate_cols(w_x).astype(jnp.float32)
    b_x = _reorder_gate_cols(b_x).astype(jnp.float32)
    w_hh_t = _reorder_gate_cols(w_hh_t).astype(jnp.bfloat16)          # bf16 MXU operand

    # Pad batch to a multiple of 8 sublanes; pad rows are dropped from the output.
    pad_b = (-batch) % 8
    obs_traj_p = (jnp.pad(obs_traj, ((0, 0), (0, pad_b), (0, 0)))
                  if pad_b else obs_traj)
    batch_p = batch + pad_b

    kernel = functools.partial(_encoder_kernel, obs_len=obs_len, h_dim=h_dim)

    final_h = pl.pallas_call(
        kernel,
        out_shape=jax.ShapeDtypeStruct((num_layers, batch_p, h_dim), jnp.float32),
        in_specs=[pl.BlockSpec(memory_space=pltpu.MemorySpace.VMEM)] * 4,
        out_specs=pl.BlockSpec(memory_space=pltpu.MemorySpace.VMEM),
        scratch_shapes=[pltpu.VMEM((obs_len, batch_p, 4 * h_dim), jnp.float32)],
    )(obs_traj_p.astype(jnp.float32), w_x, b_x, w_hh_t)

    return final_h[:, :batch, :]


def encoder_reference(obs_traj, params, *, embedding_dim, h_dim):
    """Pure-JAX f32 reference with the original (unfused) semantics."""
    obs_len, batch, _ = obs_traj.shape
    emb = obs_traj.reshape(-1, 2) @ params["w_emb"].T + params["b_emb"]
    emb = emb.reshape(obs_len, batch, embedding_dim)

    def step(carry, x_t):
        h, c = carry
        gates = (x_t @ params["w_ih"].T + h @ params["w_hh"].T
                 + params["b_ih"] + params["b_hh"])
        i = jax.nn.sigmoid(gates[:, 0 * h_dim:1 * h_dim])
        f = jax.nn.sigmoid(gates[:, 1 * h_dim:2 * h_dim])
        g = jnp.tanh(gates[:, 2 * h_dim:3 * h_dim])
        o = jax.nn.sigmoid(gates[:, 3 * h_dim:4 * h_dim])
        c = f * c + i * g
        h = o * jnp.tanh(c)
        return (h, c), None

    h0 = jnp.zeros((batch, h_dim), jnp.float32)
    c0 = jnp.zeros((batch, h_dim), jnp.float32)
    (h_final, _), _ = jax.lax.scan(step, (h0, c0), emb)
    return h_final[None]  # (1, batch, h_dim)


if __name__ == "__main__":
    embedding_dim = 64
    h_dim = 64
    num_layers = 1
    obs_len = 8
    batch = 8

    key = jax.random.PRNGKey(0)
    k = jax.random.split(key, 7)

    # Deterministic synthetic parameters (shapes match nn.Linear(2, emb) and
    # nn.LSTM(emb, h_dim, 1): weight_ih (4h, emb), weight_hh (4h, h), biases (4h,)).
    scale = 0.1
    params = {
        "w_emb": scale * jax.random.normal(k[0], (embedding_dim, 2), jnp.float32),
        "b_emb": scale * jax.random.normal(k[1], (embedding_dim,), jnp.float32),
        "w_ih": scale * jax.random.normal(k[2], (4 * h_dim, embedding_dim), jnp.float32),
        "w_hh": scale * jax.random.normal(k[3], (4 * h_dim, h_dim), jnp.float32),
        "b_ih": scale * jax.random.normal(k[4], (4 * h_dim,), jnp.float32),
        "b_hh": scale * jax.random.normal(k[5], (4 * h_dim,), jnp.float32),
    }

    obs_traj = jax.random.normal(k[6], (obs_len, batch, 2), jnp.float32)

    final_h = encoder_forward(obs_traj, params,
                              embedding_dim=embedding_dim, h_dim=h_dim,
                              num_layers=num_layers)
    final_h = jax.block_until_ready(final_h)

    ref = encoder_reference(obs_traj, params,
                            embedding_dim=embedding_dim, h_dim=h_dim)
    assert final_h.shape == (num_layers, batch, h_dim)
    # Tolerance relaxed vs. pure-f32 because the recurrent matmul uses bf16
    # operands (f32 accumulation); observed error ~1e-3 at these shapes.
    assert jnp.allclose(final_h, ref, atol=2e-2, rtol=2e-2), (
        float(jnp.max(jnp.abs(final_h - ref))))

    print("KERNEL_OK")
</pallas_src>

<mosaic_0001>
module attributes {stable_mosaic.version = 11 : i64} {
  func.func @_encoder_kernel(%arg0: memref<8x8x2xf32, #tpu.memory_space<vmem>>, %arg1: memref<2x256xf32, #tpu.memory_space<vmem>>, %arg2: memref<1x256xf32, #tpu.memory_space<vmem>>, %arg3: memref<64x256xbf16, #tpu.memory_space<vmem>>, %arg4: memref<1x8x64xf32, #tpu.memory_space<vmem>>, %arg5: memref<8x8x256xf32, #tpu.memory_space<vmem>>) attributes {dimension_semantics = [], scalar_prefetch = 0 : i64, scratch_operands = 1 : i64, tpu.core_type = #tpu.core_type<tc>} {
    %c0 = arith.constant 0 : index
    %c0_0 = arith.constant 0 : index
    %c0_1 = arith.constant 0 : index
    %0 = vector.load %arg0[%c0, %c0_0, %c0_1] : memref<8x8x2xf32, #tpu.memory_space<vmem>>, vector<8x8x2xf32>
    %1 = vector.shape_cast %0 : vector<8x8x2xf32> to vector<64x2xf32>
    %c0_2 = arith.constant 0 : index
    %c0_3 = arith.constant 0 : index
    %2 = vector.load %arg1[%c0_2, %c0_3] : memref<2x256xf32, #tpu.memory_space<vmem>>, vector<2x256xf32>
    %cst = arith.constant dense<0.000000e+00> : vector<64x256xf32>
    %3 = tpu.matmul %1, %2, %cst {dimension_numbers = #tpu.dot_dimension_numbers<[1], [0], [0], [1], [0, 0, 1, 1], [], []>} : vector<64x2xf32>, vector<2x256xf32>, vector<64x256xf32> -> vector<64x256xf32>
    %c0_4 = arith.constant 0 : index
    %c0_5 = arith.constant 0 : index
    %4 = vector.load %arg2[%c0_4, %c0_5] : memref<1x256xf32, #tpu.memory_space<vmem>>, vector<1x256xf32>
    %5 = vector.broadcast %4 : vector<1x256xf32> to vector<64x256xf32>
    %6 = arith.addf %3, %5 : vector<64x256xf32>
    %7 = vector.shape_cast %6 : vector<64x256xf32> to vector<8x8x256xf32>
    %c0_6 = arith.constant 0 : index
    %c0_7 = arith.constant 0 : index
    %c0_8 = arith.constant 0 : index
    %8 = vector.load %arg5[%c0_6, %c0_7, %c0_8] : memref<8x8x256xf32, #tpu.memory_space<vmem>>, vector<8x8x256xf32>
    tpu.vector_store %arg5[%c0_6, %c0_7, %c0_8], %7 {strides = array<i32>} : memref<8x8x256xf32, #tpu.memory_space<vmem>>, vector<8x8x256xf32>,
    %c0_9 = arith.constant 0 : index
    %c0_10 = arith.constant 0 : index
    %9 = vector.load %arg3[%c0_9, %c0_10] : memref<64x256xbf16, #tpu.memory_space<vmem>>, vector<64x256xbf16>
    %cst_11 = arith.constant 0.000000e+00 : f32
    %10 = vector.broadcast %cst_11 : f32 to vector<8x64xf32>
    %cst_12 = arith.constant 0.000000e+00 : f32
    %11 = vector.broadcast %cst_12 : f32 to vector<8x64xf32>
    %c0_i32 = arith.constant 0 : i32
    %12 = arith.index_cast %c0_i32 : i32 to index
    %c0_13 = arith.constant 0 : index
    %c0_14 = arith.constant 0 : index
    %13 = vector.load %arg5[%12, %c0_13, %c0_14] : memref<8x8x256xf32, #tpu.memory_space<vmem>>, vector<1x8x256xf32>
    %14 = vector.shape_cast %13 : vector<1x8x256xf32> to vector<8x256xf32>
    %15 = arith.truncf %10 : vector<8x64xf32> to vector<8x64xbf16>
    %cst_15 = arith.constant dense<0.000000e+00> : vector<8x256xf32>
    %16 = tpu.matmul %15, %9, %cst_15 {dimension_numbers = #tpu.dot_dimension_numbers<[1], [0], [0], [1], [0, 0, 1, 1], [], []>} : vector<8x64xbf16>, vector<64x256xbf16>, vector<8x256xf32> -> vector<8x256xf32>
    %17 = arith.addf %14, %16 : vector<8x256xf32>
    %18 = arith.negf %17 : vector<8x256xf32>
    %19 = math.exp %18 : vector<8x256xf32>
    %cst_16 = arith.constant 1.000000e+00 : f32
    %20 = vector.broadcast %cst_16 : f32 to vector<8x256xf32>
    %21 = arith.addf %20, %19 : vector<8x256xf32>
    %22 = arith.divf %20, %21 : vector<8x256xf32>
    %23 = vector.extract_strided_slice %17 {offsets = [0, 128], sizes = [8, 128], strides = [1, 1]} : vector<8x256xf32> to vector<8x128xf32>
    %24 = math.tanh %23 : vector<8x128xf32>
    %25 = vector.extract_strided_slice %22 {offsets = [0, 0], sizes = [8, 64], strides = [1, 1]} : vector<8x256xf32> to vector<8x64xf32>
    %26 = vector.extract_strided_slice %22 {offsets = [0, 64], sizes = [8, 64], strides = [1, 1]} : vector<8x256xf32> to vector<8x64xf32>
    %27 = vector.extract_strided_slice %22 {offsets = [0, 128], sizes = [8, 64], strides = [1, 1]} : vector<8x256xf32> to vector<8x64xf32>
    %28 = vector.extract_strided_slice %24 {offsets = [0, 64], sizes = [8, 64], strides = [1, 1]} : vector<8x128xf32> to vector<8x64xf32>
    %29 = arith.mulf %26, %11 : vector<8x64xf32>
    %30 = arith.mulf %25, %28 : vector<8x64xf32>
    %31 = arith.addf %29, %30 : vector<8x64xf32>
    %32 = math.tanh %31 : vector<8x64xf32>
    %33 = arith.mulf %27, %32 : vector<8x64xf32>
    %c1_i32 = arith.constant 1 : i32
    %34 = arith.index_cast %c1_i32 : i32 to index
    %c0_17 = arith.constant 0 : index
    %c0_18 = arith.constant 0 : index
    %35 = vector.load %arg5[%34, %c0_17, %c0_18] : memref<8x8x256xf32, #tpu.memory_space<vmem>>, vector<1x8x256xf32>
    %36 = vector.shape_cast %35 : vector<1x8x256xf32> to vector<8x256xf32>
    %37 = arith.truncf %33 : vector<8x64xf32> to vector<8x64xbf16>
    %cst_19 = arith.constant dense<0.000000e+00> : vector<8x256xf32>
    %38 = tpu.matmul %37, %9, %cst_19 {dimension_numbers = #tpu.dot_dimension_numbers<[1], [0], [0], [1], [0, 0, 1, 1], [], []>} : vector<8x64xbf16>, vector<64x256xbf16>, vector<8x256xf32> -> vector<8x256xf32>
    %39 = arith.addf %36, %38 : vector<8x256xf32>
    %40 = arith.negf %39 : vector<8x256xf32>
    %41 = math.exp %40 : vector<8x256xf32>
    %cst_20 = arith.constant 1.000000e+00 : f32
    %42 = vector.broadcast %cst_20 : f32 to vector<8x256xf32>
    %43 = arith.addf %42, %41 : vector<8x256xf32>
    %44 = arith.divf %42, %43 : vector<8x256xf32>
    %45 = vector.extract_strided_slice %39 {offsets = [0, 128], sizes = [8, 128], strides = [1, 1]} : vector<8x256xf32> to vector<8x128xf32>
    %46 = math.tanh %45 : vector<8x128xf32>
    %47 = vector.extract_strided_slice %44 {offsets = [0, 0], sizes = [8, 64], strides = [1, 1]} : vector<8x256xf32> to vector<8x64xf32>
    %48 = vector.extract_strided_slice %44 {offsets = [0, 64], sizes = [8, 64], strides = [1, 1]} : vector<8x256xf32> to vector<8x64xf32>
    %49 = vector.extract_strided_slice %44 {offsets = [0, 128], sizes = [8, 64], strides = [1, 1]} : vector<8x256xf32> to vector<8x64xf32>
    %50 = vector.extract_strided_slice %46 {offsets = [0, 64], sizes = [8, 64], strides = [1, 1]} : vector<8x128xf32> to vector<8x64xf32>
    %51 = arith.mulf %48, %31 : vector<8x64xf32>
    %52 = arith.mulf %47, %50 : vector<8x64xf32>
    %53 = arith.addf %51, %52 : vector<8x64xf32>
    %54 = math.tanh %53 : vector<8x64xf32>
    %55 = arith.mulf %49, %54 : vector<8x64xf32>
    %c2_i32 = arith.constant 2 : i32
    %56 = arith.index_cast %c2_i32 : i32 to index
    %c0_21 = arith.constant 0 : index
    %c0_22 = arith.constant 0 : index
    %57 = vector.load %arg5[%56, %c0_21, %c0_22] : memref<8x8x256xf32, #tpu.memory_space<vmem>>, vector<1x8x256xf32>
    %58 = vector.shape_cast %57 : vector<1x8x256xf32> to vector<8x256xf32>
    %59 = arith.truncf %55 : vector<8x64xf32> to vector<8x64xbf16>
    %cst_23 = arith.constant dense<0.000000e+00> : vector<8x256xf32>
    %60 = tpu.matmul %59, %9, %cst_23 {dimension_numbers = #tpu.dot_dimension_numbers<[1], [0], [0], [1], [0, 0, 1, 1], [], []>} : vector<8x64xbf16>, vector<64x256xbf16>, vector<8x256xf32> -> vector<8x256xf32>
    %61 = arith.addf %58, %60 : vector<8x256xf32>
    %62 = arith.negf %61 : vector<8x256xf32>
    %63 = math.exp %62 : vector<8x256xf32>
    %cst_24 = arith.constant 1.000000e+00 : f32
    %64 = vector.broadcast %cst_24 : f32 to vector<8x256xf32>
    %65 = arith.addf %64, %63 : vector<8x256xf32>
    %66 = arith.divf %64, %65 : vector<8x256xf32>
    %67 = vector.extract_strided_slice %61 {offsets = [0, 128], sizes = [8, 128], strides = [1, 1]} : vector<8x256xf32> to vector<8x128xf32>
    %68 = math.tanh %67 : vector<8x128xf32>
    %69 = vector.extract_strided_slice %66 {offsets = [0, 0], sizes = [8, 64], strides = [1, 1]} : vector<8x256xf32> to vector<8x64xf32>
    %70 = vector.extract_strided_slice %66 {offsets = [0, 64], sizes = [8, 64], strides = [1, 1]} : vector<8x256xf32> to vector<8x64xf32>
    %71 = vector.extract_strided_slice %66 {offsets = [0, 128], sizes = [8, 64], strides = [1, 1]} : vector<8x256xf32> to vector<8x64xf32>
    %72 = vector.extract_strided_slice %68 {offsets = [0, 64], sizes = [8, 64], strides = [1, 1]} : vector<8x128xf32> to vector<8x64xf32>
    %73 = arith.mulf %70, %53 : vector<8x64xf32>
    %74 = arith.mulf %69, %72 : vector<8x64xf32>
    %75 = arith.addf %73, %74 : vector<8x64xf32>
    %76 = math.tanh %75 : vector<8x64xf32>
    %77 = arith.mulf %71, %76 : vector<8x64xf32>
    %c3_i32 = arith.constant 3 : i32
    %78 = arith.index_cast %c3_i32 : i32 to index
    %c0_25 = arith.constant 0 : index
    %c0_26 = arith.constant 0 : index
    %79 = vector.load %arg5[%78, %c0_25, %c0_26] : memref<8x8x256xf32, #tpu.memory_space<vmem>>, vector<1x8x256xf32>
    %80 = vector.shape_cast %79 : vector<1x8x256xf32> to vector<8x256xf32>
    %81 = arith.truncf %77 : vector<8x64xf32> to vector<8x64xbf16>
    %cst_27 = arith.constant dense<0.000000e+00> : vector<8x256xf32>
    %82 = tpu.matmul %81, %9, %cst_27 {dimension_numbers = #tpu.dot_dimension_numbers<[1], [0], [0], [1], [0, 0, 1, 1], [], []>} : vector<8x64xbf16>, vector<64x256xbf16>, vector<8x256xf32> -> vector<8x256xf32>
    %83 = arith.addf %80, %82 : vector<8x256xf32>
    %84 = arith.negf %83 : vector<8x256xf32>
    %85 = math.exp %84 : vector<8x256xf32>
    %cst_28 = arith.constant 1.000000e+00 : f32
    %86 = vector.broadcast %cst_28 : f32 to vector<8x256xf32>
    %87 = arith.addf %86, %85 : vector<8x256xf32>
    %88 = arith.divf %86, %87 : vector<8x256xf32>
    %89 = vector.extract_strided_slice %83 {offsets = [0, 128], sizes = [8, 128], strides = [1, 1]} : vector<8x256xf32> to vector<8x128xf32>
    %90 = math.tanh %89 : vector<8x128xf32>
    %91 = vector.extract_strided_slice %88 {offsets = [0, 0], sizes = [8, 64], strides = [1, 1]} : vector<8x256xf32> to vector<8x64xf32>
    %92 = vector.extract_strided_slice %88 {offsets = [0, 64], sizes = [8, 64], strides = [1, 1]} : vector<8x256xf32> to vector<8x64xf32>
    %93 = vector.extract_strided_slice %88 {offsets = [0, 128], sizes = [8, 64], strides = [1, 1]} : vector<8x256xf32> to vector<8x64xf32>
    %94 = vector.extract_strided_slice %90 {offsets = [0, 64], sizes = [8, 64], strides = [1, 1]} : vector<8x128xf32> to vector<8x64xf32>
    %95 = arith.mulf %92, %75 : vector<8x64xf32>
    %96 = arith.mulf %91, %94 : vector<8x64xf32>
    %97 = arith.addf %95, %96 : vector<8x64xf32>
    %98 = math.tanh %97 : vector<8x64xf32>
    %99 = arith.mulf %93, %98 : vector<8x64xf32>
    %c4_i32 = arith.constant 4 : i32
    %100 = arith.index_cast %c4_i32 : i32 to index
    %c0_29 = arith.constant 0 : index
    %c0_30 = arith.constant 0 : index
    %101 = vector.load %arg5[%100, %c0_29, %c0_30] : memref<8x8x256xf32, #tpu.memory_space<vmem>>, vector<1x8x256xf32>
    %102 = vector.shape_cast %101 : vector<1x8x256xf32> to vector<8x256xf32>
    %103 = arith.truncf %99 : vector<8x64xf32> to vector<8x64xbf16>
    %cst_31 = arith.constant dense<0.000000e+00> : vector<8x256xf32>
    %104 = tpu.matmul %103, %9, %cst_31 {dimension_numbers = #tpu.dot_dimension_numbers<[1], [0], [0], [1], [0, 0, 1, 1], [], []>} : vector<8x64xbf16>, vector<64x256xbf16>, vector<8x256xf32> -> vector<8x256xf32>
    %105 = arith.addf %102, %104 : vector<8x256xf32>
    %106 = arith.negf %105 : vector<8x256xf32>
    %107 = math.exp %106 : vector<8x256xf32>
    %cst_32 = arith.constant 1.000000e+00 : f32
    %108 = vector.broadcast %cst_32 : f32 to vector<8x256xf32>
    %109 = arith.addf %108, %107 : vector<8x256xf32>
    %110 = arith.divf %108, %109 : vector<8x256xf32>
    %111 = vector.extract_strided_slice %105 {offsets = [0, 128], sizes = [8, 128], strides = [1, 1]} : vector<8x256xf32> to vector<8x128xf32>
    %112 = math.tanh %111 : vector<8x128xf32>
    %113 = vector.extract_strided_slice %110 {offsets = [0, 0], sizes = [8, 64], strides = [1, 1]} : vector<8x256xf32> to vector<8x64xf32>
    %114 = vector.extract_strided_slice %110 {offsets = [0, 64], sizes = [8, 64], strides = [1, 1]} : vector<8x256xf32> to vector<8x64xf32>
    %115 = vector.extract_strided_slice %110 {offsets = [0, 128], sizes = [8, 64], strides = [1, 1]} : vector<8x256xf32> to vector<8x64xf32>
    %116 = vector.extract_strided_slice %112 {offsets = [0, 64], sizes = [8, 64], strides = [1, 1]} : vector<8x128xf32> to vector<8x64xf32>
    %117 = arith.mulf %114, %97 : vector<8x64xf32>
    %118 = arith.mulf %113, %116 : vector<8x64xf32>
    %119 = arith.addf %117, %118 : vector<8x64xf32>
    %120 = math.tanh %119 : vector<8x64xf32>
    %121 = arith.mulf %115, %120 : vector<8x64xf32>
    %c5_i32 = arith.constant 5 : i32
    %122 = arith.index_cast %c5_i32 : i32 to index
    %c0_33 = arith.constant 0 : index
    %c0_34 = arith.constant 0 : index
    %123 = vector.load %arg5[%122, %c0_33, %c0_34] : memref<8x8x256xf32, #tpu.memory_space<vmem>>, vector<1x8x256xf32>
    %124 = vector.shape_cast %123 : vector<1x8x256xf32> to vector<8x256xf32>
    %125 = arith.truncf %121 : vector<8x64xf32> to vector<8x64xbf16>
    %cst_35 = arith.constant dense<0.000000e+00> : vector<8x256xf32>
    %126 = tpu.matmul %125, %9, %cst_35 {dimension_numbers = #tpu.dot_dimension_numbers<[1], [0], [0], [1], [0, 0, 1, 1], [], []>} : vector<8x64xbf16>, vector<64x256xbf16>, vector<8x256xf32> -> vector<8x256xf32>
    %127 = arith.addf %124, %126 : vector<8x256xf32>
    %128 = arith.negf %127 : vector<8x256xf32>
    %129 = math.exp %128 : vector<8x256xf32>
    %cst_36 = arith.constant 1.000000e+00 : f32
    %130 = vector.broadcast %cst_36 : f32 to vector<8x256xf32>
    %131 = arith.addf %130, %129 : vector<8x256xf32>
    %132 = arith.divf %130, %131 : vector<8x256xf32>
    %133 = vector.extract_strided_slice %127 {offsets = [0, 128], sizes = [8, 128], strides = [1, 1]} : vector<8x256xf32> to vector<8x128xf32>
    %134 = math.tanh %133 : vector<8x128xf32>
    %135 = vector.extract_strided_slice %132 {offsets = [0, 0], sizes = [8, 64], strides = [1, 1]} : vector<8x256xf32> to vector<8x64xf32>
    %136 = vector.extract_strided_slice %132 {offsets = [0, 64], sizes = [8, 64], strides = [1, 1]} : vector<8x256xf32> to vector<8x64xf32>
    %137 = vector.extract_strided_slice %132 {offsets = [0, 128], sizes = [8, 64], strides = [1, 1]} : vector<8x256xf32> to vector<8x64xf32>
    %138 = vector.extract_strided_slice %134 {offsets = [0, 64], sizes = [8, 64], strides = [1, 1]} : vector<8x128xf32> to vector<8x64xf32>
    %139 = arith.mulf %136, %119 : vector<8x64xf32>
    %140 = arith.mulf %135, %138 : vector<8x64xf32>
    %141 = arith.addf %139, %140 : vector<8x64xf32>
    %142 = math.tanh %141 : vector<8x64xf32>
    %143 = arith.mulf %137, %142 : vector<8x64xf32>
    %c6_i32 = arith.constant 6 : i32
    %144 = arith.index_cast %c6_i32 : i32 to index
    %c0_37 = arith.constant 0 : index
    %c0_38 = arith.constant 0 : index
    %145 = vector.load %arg5[%144, %c0_37, %c0_38] : memref<8x8x256xf32, #tpu.memory_space<vmem>>, vector<1x8x256xf32>
    %146 = vector.shape_cast %145 : vector<1x8x256xf32> to vector<8x256xf32>
    %147 = arith.truncf %143 : vector<8x64xf32> to vector<8x64xbf16>
    %cst_39 = arith.constant dense<0.000000e+00> : vector<8x256xf32>
    %148 = tpu.matmul %147, %9, %cst_39 {dimension_numbers = #tpu.dot_dimension_numbers<[1], [0], [0], [1], [0, 0, 1, 1], [], []>} : vector<8x64xbf16>, vector<64x256xbf16>, vector<8x256xf32> -> vector<8x256xf32>
    %149 = arith.addf %146, %148 : vector<8x256xf32>
    %150 = arith.negf %149 : vector<8x256xf32>
    %151 = math.exp %150 : vector<8x256xf32>
    %cst_40 = arith.constant 1.000000e+00 : f32
    %152 = vector.broadcast %cst_40 : f32 to vector<8x256xf32>
    %153 = arith.addf %152, %151 : vector<8x256xf32>
    %154 = arith.divf %152, %153 : vector<8x256xf32>
    %155 = vector.extract_strided_slice %149 {offsets = [0, 128], sizes = [8, 128], strides = [1, 1]} : vector<8x256xf32> to vector<8x128xf32>
    %156 = math.tanh %155 : vector<8x128xf32>
    %157 = vector.extract_strided_slice %154 {offsets = [0, 0], sizes = [8, 64], strides = [1, 1]} : vector<8x256xf32> to vector<8x64xf32>
    %158 = vector.extract_strided_slice %154 {offsets = [0, 64], sizes = [8, 64], strides = [1, 1]} : vector<8x256xf32> to vector<8x64xf32>
    %159 = vector.extract_strided_slice %154 {offsets = [0, 128], sizes = [8, 64], strides = [1, 1]} : vector<8x256xf32> to vector<8x64xf32>
    %160 = vector.extract_strided_slice %156 {offsets = [0, 64], sizes = [8, 64], strides = [1, 1]} : vector<8x128xf32> to vector<8x64xf32>
    %161 = arith.mulf %158, %141 : vector<8x64xf32>
    %162 = arith.mulf %157, %160 : vector<8x64xf32>
    %163 = arith.addf %161, %162 : vector<8x64xf32>
    %164 = math.tanh %163 : vector<8x64xf32>
    %165 = arith.mulf %159, %164 : vector<8x64xf32>
    %c7_i32 = arith.constant 7 : i32
    %166 = arith.index_cast %c7_i32 : i32 to index
    %c0_41 = arith.constant 0 : index
    %c0_42 = arith.constant 0 : index
    %167 = vector.load %arg5[%166, %c0_41, %c0_42] : memref<8x8x256xf32, #tpu.memory_space<vmem>>, vector<1x8x256xf32>
    %168 = vector.shape_cast %167 : vector<1x8x256xf32> to vector<8x256xf32>
    %169 = arith.truncf %165 : vector<8x64xf32> to vector<8x64xbf16>
    %cst_43 = arith.constant dense<0.000000e+00> : vector<8x256xf32>
    %170 = tpu.matmul %169, %9, %cst_43 {dimension_numbers = #tpu.dot_dimension_numbers<[1], [0], [0], [1], [0, 0, 1, 1], [], []>} : vector<8x64xbf16>, vector<64x256xbf16>, vector<8x256xf32> -> vector<8x256xf32>
    %171 = arith.addf %168, %170 : vector<8x256xf32>
    %172 = arith.negf %171 : vector<8x256xf32>
    %173 = math.exp %172 : vector<8x256xf32>
    %cst_44 = arith.constant 1.000000e+00 : f32
    %174 = vector.broadcast %cst_44 : f32 to vector<8x256xf32>
    %175 = arith.addf %174, %173 : vector<8x256xf32>
    %176 = arith.divf %174, %175 : vector<8x256xf32>
    %177 = vector.extract_strided_slice %171 {offsets = [0, 128], sizes = [8, 128], strides = [1, 1]} : vector<8x256xf32> to vector<8x128xf32>
    %178 = math.tanh %177 : vector<8x128xf32>
    %179 = vector.extract_strided_slice %176 {offsets = [0, 0], sizes = [8, 64], strides = [1, 1]} : vector<8x256xf32> to vector<8x64xf32>
    %180 = vector.extract_strided_slice %176 {offsets = [0, 64], sizes = [8, 64], strides = [1, 1]} : vector<8x256xf32> to vector<8x64xf32>
    %181 = vector.extract_strided_slice %176 {offsets = [0, 128], sizes = [8, 64], strides = [1, 1]} : vector<8x256xf32> to vector<8x64xf32>
    %182 = vector.extract_strided_slice %178 {offsets = [0, 64], sizes = [8, 64], strides = [1, 1]} : vector<8x128xf32> to vector<8x64xf32>
    %183 = arith.mulf %180, %163 : vector<8x64xf32>
    %184 = arith.mulf %179, %182 : vector<8x64xf32>
    %185 = arith.addf %183, %184 : vector<8x64xf32>
    %186 = math.tanh %185 : vector<8x64xf32>
    %187 = arith.mulf %181, %186 : vector<8x64xf32>
    %c8_i32 = arith.constant 8 : i32
    %c0_45 = arith.constant 0 : index
    %c0_46 = arith.constant 0 : index
    %c0_47 = arith.constant 0 : index
    %188 = vector.load %arg4[%c0_45, %c0_46, %c0_47] : memref<1x8x64xf32, #tpu.memory_space<vmem>>, vector<1x8x64xf32>
    %189 = vector.shape_cast %188 : vector<1x8x64xf32> to vector<8x64xf32>
    %190 = vector.shape_cast %187 : vector<8x64xf32> to vector<1x8x64xf32>
    tpu.vector_store %arg4[%c0_45, %c0_46, %c0_47], %190 {strides = array<i32>} : memref<1x8x64xf32, #tpu.memory_space<vmem>>, vector<1x8x64xf32>,
    return
  }
}

</mosaic_0001>

<bundles_post_ra>
// kernel: tpu_custom_call.1
= control target key start
LH: loop header
LB: loop body
LE: loop exit
PB: predicated region body
PF: predicated region fallthrough
CT: control target
= control target key end

     0   :  { %v1088_v2 = vmov 0.0   ;;  %v1089_v4 = vmov 0   ;;  %vm74_vm0 = vcmask 1041408   ;;  %vm49_vm1 = vcmask 15360   ;;  %s1374_s0 = inlined_call_operand.vmem [shape: f32[8,8,2], index: 0, kind: input, shape index: {}]   ;;  %s1375_s1 = inlined_call_operand.vmem [shape: f32[2,256], index: 1, kind: input, shape index: {}]   ;;  %s1376_s2 = inlined_call_operand.vmem [shape: f32[1,256], index: 2, kind: input, shape index: {}]   ;;  %s1377_s3 = inlined_call_operand.vmem [shape: bf16[64,256], index: 3, kind: input, shape index: {}]   ;;  %s1378_s4 = inlined_call_operand.hbm [shape: f32[1,8,64], index: 4, kind: output, shape index: {}]  }
   0x1   :  { %v1120_v0 = vld [vmem:[%s1377_s3 + $0x4] ss:$8 sps:$4 sm:$0xff]   ;;  %v1125_v1 = vld [vmem:[%s1377_s3] ss:$8 sps:$4 sm:$0xff]   ;;  %143 = vmatprep.mubr.f32.mxu0 %v1088_v2  ;;  %v1132_v3 = vld [vmem:[%s1377_s3 + $0x14] ss:$8 sps:$4 sm:$0xff]   ;;  %294 = vmatprep.mubr.bf16.mxu1 %v1089_v4 }
   0x2   :  { %262 = vmatprep.subr.bf16.mxu1 %v1120_v0  ;;  %v1139_v5 = vld [vmem:[%s1377_s3 + $0x10] ss:$8 sps:$4 sm:$0xff]   ;;  %v1144_v6 = vld [vmem:[%s1377_s3 + $0x24] ss:$8 sps:$4 sm:$0xff]  }
   0x3   :  { %263 = vmatpush1.bf16.msra.mxu1 %v1125_v1  ;;  %v910_v7 = vld.sshfl [vmem:[%s1375_s1] sm:$0x33 pattern:$0x76325410] }
   0x4   :  { %264 = vmatprep.subr.bf16.mxu1 %v1132_v3  ;;  %v48_v8 = vcombine.high %v910_v7, %v910_v7  ;;  %v19_v9 = vld [vmem:[%s1374_s0] sm:$0xff] }
   0x5   :  { %9 = vsyncpa [#allocation4], 0  ;;  %v1157_v10 = vld [vmem:[%s1377_s3 + $0x20] ss:$8 sps:$4 sm:$0xff]   ;;  %v1163_v11 = vld [vmem:[%s1377_s3 + $0x34] ss:$8 sps:$4 sm:$0xff]   ;;  %v30_v13 = vlaneseq }
   0x6   :  { %911 = vmatprep.subr.msk.mxu0 %vm74_vm0, %v48_v8  ;;  %v1173_v12 = vld [vmem:[%s1377_s3 + $0x30] ss:$8 sps:$4 sm:$0xff]   ;;  %v28_v16 = vld [vmem:[%s1376_s2] sm:$0x3]  ;;  %s1090_s2 = smov 64   ;;  %v20_v40 = vld [vmem:[%s1374_s0 + $0x8] sm:$0xff] }
   0x7   :  { %265 = vmatpush1.bf16.msra.mxu1 %v1139_v5  ;;  %912 = vmatpush1.msk.msra.mxu0 %vm74_vm0, %v910_v7  ;;  %v31_v14 = vshrl.u32 %v30_v13, 7  ;;  %vm258_vm2 = vcmask 523264   ;;  %v22_v13 = vld [vmem:[%s1374_s0 + $0x18] sm:$0xff] }
   0x8   :  { %266 = vmatprep.subr.bf16.mxu1 %v1144_v6  ;;  %913 = vmatmul.mubr.msk.f32.vlgmr.msra.gmra.mrb[0].mxu0 %vm49_vm1, %v19_v9  ;;  %v21_v9 = vld [vmem:[%s1374_s0 + $0x10] sm:$0xff] }
   0x9   :  { %422 = vmatprep.subr.bf16.mxu0 %v1120_v0  ;;  %149 = vmatprep.mubr.f32.mxu0 %v1088_v2  ;;  %v32_v15 = vsub.s32 0, %v31_v14  ;;  %v36_v17 = vsub.s32 1, %v31_v14  ;;  %v23_v14 = vld [vmem:[%s1374_s0 + $0x20] sm:$0xff] }
   0xa   :  { %423 = vmatpush1.bf16.msra.mxu0 %v1125_v1 }
   0xb   :  { %267 = vmatpush1.bf16.msra.mxu1 %v1157_v10  ;;  %424 = vmatprep.subr.bf16.mxu0 %v1132_v3  ;;  %v1198_v20 = vrot.slane %v28_v16, %v32_v15  ;;  %v1200_v21 = vrot.slane %v28_v16, %v36_v17  ;;  %v24_v15 = vld [vmem:[%s1374_s0 + $0x28] sm:$0xff]  ;;  %v25_v16 = vld [vmem:[%s1374_s0 + $0x30] sm:$0xff]  ;;  %v26_v17 = vld [vmem:[%s1374_s0 + $0x38] sm:$0xff]  ;;  %s1091_s0 = smov [#allocation3]  }
   0xc   :  { %268 = vmatprep.subr.bf16.mxu1 %v1163_v11  ;;  %914 = vmatmul.mubr.msk.f32.gmra.mrb[2].mxu0 %vm49_vm1, %v20_v40  ;;  %s902_s23 = sshll.u32 %s1091_s0, 4  ;;  %s903_s23 = int_to_ptr.vmem [resolvable:$true] %s902_s23 }
   0xd   :  { %155 = vmatprep.mubr.f32.mxu0 %v1088_v2  ;;  %s1064_s24 = scalar_lea.vmem %s903_s23, 128  ;;  %p1069_p1 = scmp.lt.s32.totalorder %s903_s23, %s903_s23 }
   0xe   :  { %425 = vmatpush1.bf16.msra.mxu0 %v1139_v5  ;;  %p1065_p0 = scmp.ne.s32.totalorder %s903_s23, %s1064_s24  ;;  %p1070_p2 = scmp.lt.s32.totalorder %s1064_s24, %s1064_s24 }
   0xf   :  { %269 = vmatpush1.bf16.msra.mxu1 %v1173_v12  ;;  %426 = vmatprep.subr.bf16.mxu0 %v1144_v6 }
  0x10   :  { %342 = vmatprep.subr.bf16.mxu1 %v1120_v0  ;;  %915 = vmatmul.mubr.msk.f32.gmra.mrb[4].mxu0 %vm49_vm1, %v21_v9  ;;  %p1071_p3 = por %p1070_p2, %p1069_p1 }
  0x11   :  { %161 = vmatprep.mubr.f32.mxu0 %v1088_v2 }
  0x12   :  { %295 = vmatmul.mubr.bf16.vlgmr.msra.gmra.mrb[0].mxu1 %v1089_v4  ;;  %427 = vmatpush1.bf16.msra.mxu0 %v1157_v10  ;;  %p1072_p4 = pnand %p1071_p3, %p1065_p0 }
  0x13   :  { %343 = vmatpush1.bf16.msra.mxu1 %v1125_v1  ;;  %374 = vmatprep.mubr.bf16.mxu1 %v1089_v4 }
  0x14   :  { %344 = vmatprep.subr.bf16.mxu1 %v1132_v3  ;;  %428 = vmatprep.subr.bf16.mxu0 %v1163_v11 }
  0x15   :  { %916 = vmatmul.mubr.msk.f32.gmra.mrb[6].mxu0 %vm49_vm1, %v22_v13 }
  0x16   :  { %429 = vmatpush1.bf16.msra.mxu0 %v1173_v12  ;;  %167 = vmatprep.mubr.f32.mxu0 %v1088_v2 }
  0x17   :  { %345 = vmatpush1.bf16.msra.mxu1 %v1139_v5  ;;  %582 = vmatprep.subr.bf16.mxu0 %v1120_v0 }
  0x18   :  { %346 = vmatprep.subr.bf16.mxu1 %v1144_v6 }
  0x19   :  { %917 = vmatmul.mubr.msk.f32.gmra.mrb[8].mxu0 %vm49_vm1, %v23_v14 }
  0x1a   :  { %173 = vmatprep.mubr.f32.mxu0 %v1088_v2 }
  0x1b   :  { %347 = vmatpush1.bf16.msra.mxu1 %v1157_v10 }
  0x1c   :  { %348 = vmatprep.subr.bf16.mxu1 %v1163_v11 }
  0x1d   :  { %918 = vmatmul.mubr.msk.f32.gmra.mrb[10].mxu0 %vm49_vm1, %v24_v15 }
  0x1e   :  { %179 = vmatprep.mubr.f32.mxu0 %v1088_v2 }
  0x1f   :  { %349 = vmatpush1.bf16.msra.mxu1 %v1173_v12 }
  0x20   :  { %502 = vmatprep.subr.bf16.mxu1 %v1120_v0 }
  0x21   :  { %919 = vmatmul.mubr.msk.f32.gmra.mrb[12].mxu0 %vm49_vm1, %v25_v16 }
  0x22   :  { %185 = vmatprep.mubr.f32.mxu0 %v1088_v2 }
  0x25   :  { %920 = vmatmul.mubr.msk.f32.gmra.mrb[14].mxu0 %vm49_vm1, %v26_v17 }
  0x26   :  { %454 = vmatprep.mubr.bf16.mxu0 %v1089_v4 }
  0xdb   :  { %v145_v18 = vpop.f32.mrb[0].mxu0 }
  0xdc   :  { %v147_v19 = vpop.f32.mrb[1].mxu0  ;;  %v146_v22 = vadd.f32 %v145_v18, %v1198_v20 }
  0xdd   :  { %v148_v23 = vadd.f32 %v147_v19, %v1200_v21 }
  0xdf   :  { %v151_v49 = vpop.f32.mrb[2].mxu0 }
  0xe0   :  { %v153_v50 = vpop.f32.mrb[3].mxu0  ;;  %v152_v51 = vadd.f32 %v151_v49, %v1198_v20 }
  0xe1   :  { %v154_v52 = vadd.f32 %v153_v50, %v1200_v21 }
  0xe5   :  { %v296_v24 = vpop.f32.mrb[0].mxu1 }
  0xe6   :  { %v303_v25 = vadd.f32 %v296_v24, %v146_v22  ;;  %v298_v26 = vpop.f32.mrb[1].mxu1 }
  0xe7   :  { %v304_v27 = vadd.f32 %v298_v26, %v148_v23  ;;  %v300_v28 = vpop.f32.mrb[2].mxu1 }
  0xe8   :  { %v301_v29 = vpop.f32.mrb[3].mxu1  ;;  %v929_v31 = vmul.f32 -1.442695, %v303_v25  ;;  %v157_v25 = vpop.f32.mrb[4].mxu0 }
  0xe9   :  { %968 = vtanh.f32 %v304_v27  ;;  %v930_v42 = vmul.f32 -1.442695, %v304_v27  ;;  %v159_v26 = vpop.f32.mrb[5].mxu0 }
  0xea   :  { %970 = vpow2.f32 %v929_v31  ;;  %v1261_v2 = vpop.f32.mrb[6].mxu0 }
  0xeb   :  { %v1263_v27 = vpop.f32.mrb[7].mxu0  ;;  %v164_v14 = vadd.f32 %v1261_v2, %v1198_v20 }
  0xec   :  { %v1265_v28 = vpop.f32.mrb[8].mxu0  ;;  %v166_v15 = vadd.f32 %v1263_v27, %v1200_v21 }
  0xed   :  { %v1267_v29 = vpop.f32.mrb[9].mxu0 }
  0xf3   :  { %v969_v30 = vpop.eup %968 }
  0xf4   :  { %320 = vrot.lane.b32.xlu0 %v969_v30, %s1090_s2  ;;  %v971_v32 = vpop.eup %970  ;;  %v1269_v30 = vpop.f32.mrb[10].mxu0 }
  0xf5   :  { %v311_v33 = vadd.f32 1.0, %v971_v32  ;;  %v1271_v32 = vpop.f32.mrb[11].mxu0 }
  0xf7   :  { %972 = vrcp.f32 %v311_v33 }
 0x101   :  { %v973_v34 = vpop.eup %972 }
 0x102   :  { %v318_v37 = vmul.f32 0.0, %v973_v34 }
 0x166   :  { %v321_v35 = vpop.permute.xlu0 %320 }
 0x167   :  { %v323_v36 = vmul.f32 %v973_v34, %v321_v35  ;;  %v1273_v34 = vpop.f32.mrb[12].mxu0 }
 0x168   :  { %v1275_v35 = vpop.f32.mrb[13].mxu0 }
 0x169   :  { %325 = vrot.lane.b32.xlu0 %v323_v36, %s1090_s2  ;;  %v1277_v36 = vpop.f32.mrb[14].mxu0 }
 0x1db   :  { %v326_v38 = vpop.permute.xlu0 %325 }
 0x1dc   :  { %v1206_v39 = vadd.f32 %v326_v38, %v318_v37  ;;  %v1279_v37 = vpop.f32.mrb[15].mxu0 }
 0x1de   :  { %974 = vtanh.f32 %v1206_v39 }
 0x1df   :  { %976 = vpow2.f32 %v930_v42  ;;  %v158_v42 = vadd.f32 %v157_v25, %v1198_v20 }
 0x1e8   :  { %v975_v41 = vpop.eup %974 }
 0x1e9   :  { %331 = vrot.lane.b32.xlu1 %v975_v41, %s1090_s2  ;;  %v977_v43 = vpop.eup %976 }
 0x1ea   :  { %v312_v44 = vadd.f32 1.0, %v977_v43  ;;  %v160_v43 = vadd.f32 %v159_v26, %v1200_v21 }
 0x1ec   :  { %978 = vrcp.f32 %v312_v44 }
 0x1f6   :  { %v979_v45 = vpop.eup %978 }
 0x25b   :  { %v332_v46 = vpop.permute.xlu1 %331 }
 0x25c   :  { %v334_v47 = vmul.f32 %v979_v45, %v332_v46 }
 0x25e   :  { %v338_v48 = vpack.c.bf16 %v334_v47, %v334_v47 }
 0x260   :  { %931 = vmatmul.mubr.msk.bf16.vlgmr.msra.gmra.mrb[4].mxu1 %vm258_vm2, %v338_v48 }
 0x261   :  { %503 = vmatpush1.bf16.msra.mxu1 %v1125_v1  ;;  %534 = vmatprep.mubr.bf16.mxu1 %v1089_v4 }
 0x262   :  { %504 = vmatprep.subr.bf16.mxu1 %v1132_v3 }
 0x265   :  { %505 = vmatpush1.bf16.msra.mxu1 %v1139_v5 }
 0x266   :  { %506 = vmatprep.subr.bf16.mxu1 %v1144_v6 }
 0x269   :  { %507 = vmatpush1.bf16.msra.mxu1 %v1157_v10 }
 0x26a   :  { %508 = vmatprep.subr.bf16.mxu1 %v1163_v11 }
 0x26d   :  { %509 = vmatpush1.bf16.msra.mxu1 %v1173_v12 }
 0x26e   :  { %662 = vmatprep.subr.bf16.mxu1 %v1120_v0 }
 0x333   :  { %v376_v53 = vpop.f32.mrb[4].mxu1 }
 0x334   :  { %v383_v54 = vadd.f32 %v376_v53, %v152_v51  ;;  %v378_v55 = vpop.f32.mrb[5].mxu1 }
 0x335   :  { %v384_v56 = vadd.f32 %v378_v55, %v154_v52  ;;  %v380_v57 = vpop.f32.mrb[6].mxu1 }
 0x336   :  { %v381_v58 = vpop.f32.mrb[7].mxu1  ;;  %v932_v60 = vmul.f32 -1.442695, %v383_v54 }
 0x337   :  { %980 = vtanh.f32 %v384_v56  ;;  %v933_v24 = vmul.f32 -1.442695, %v384_v56 }
 0x338   :  { %982 = vpow2.f32 %v932_v60 }
 0x341   :  { %v981_v59 = vpop.eup %980 }
 0x342   :  { %400 = vrot.lane.b32.xlu1 %v981_v59, %s1090_s2  ;;  %v983_v61 = vpop.eup %982 }
 0x343   :  { %v391_v62 = vadd.f32 1.0, %v983_v61 }
 0x345   :  { %984 = vrcp.f32 %v391_v62 }
 0x34f   :  { %v985_v63 = vpop.eup %984 }
 0x350   :  { %v398_v18 = vmul.f32 %v985_v63, %v1206_v39 }
 0x3b4   :  { %v401_v7 = vpop.permute.xlu1 %400 }
 0x3b5   :  { %v403_v8 = vmul.f32 %v985_v63, %v401_v7 }
 0x3b7   :  { %405 = vrot.lane.b32.xlu0 %v403_v8, %s1090_s2 }
 0x429   :  { %v406_v19 = vpop.permute.xlu0 %405 }
 0x42a   :  { %v408_v22 = vadd.f32 %v406_v19, %v398_v18 }
 0x42c   :  { %986 = vtanh.f32 %v408_v22 }
 0x42d   :  { %988 = vpow2.f32 %v933_v24 }
 0x436   :  { %v987_v23 = vpop.eup %986 }
 0x437   :  { %411 = vrot.lane.b32.xlu1 %v987_v23, %s1090_s2  ;;  %v989_v31 = vpop.eup %988 }
 0x438   :  { %v392_v33 = vadd.f32 1.0, %v989_v31 }
 0x43a   :  { %990 = vrcp.f32 %v392_v33 }
 0x444   :  { %v991_v38 = vpop.eup %990 }
 0x4a9   :  { %v412_v39 = vpop.permute.xlu1 %411 }
 0x4aa   :  { %v414_v40 = vmul.f32 %v991_v38, %v412_v39 }
 0x4ac   :  { %v418_v41 = vpack.c.bf16 %v414_v40, %v414_v40 }
 0x4ae   :  { %934 = vmatmul.mubr.msk.bf16.vlgmr.msra.gmra.mrb[16].mxu0 %vm258_vm2, %v418_v41 }
 0x4af   :  { %583 = vmatpush1.bf16.msra.mxu0 %v1125_v1  ;;  %614 = vmatprep.mubr.bf16.mxu0 %v1089_v4 }
 0x4b0   :  { %584 = vmatprep.subr.bf16.mxu0 %v1132_v3 }
 0x4b3   :  { %585 = vmatpush1.bf16.msra.mxu0 %v1139_v5 }
 0x4b4   :  { %586 = vmatprep.subr.bf16.mxu0 %v1144_v6 }
 0x4b7   :  { %587 = vmatpush1.bf16.msra.mxu0 %v1157_v10 }
 0x4b8   :  { %588 = vmatprep.subr.bf16.mxu0 %v1163_v11 }
 0x4bb   :  { %589 = vmatpush1.bf16.msra.mxu0 %v1173_v12 }
 0x4bc   :  { %742 = vmatprep.subr.bf16.mxu0 %v1120_v0 }
 0x581   :  { %v456_v44 = vpop.f32.mrb[16].mxu0 }
 0x582   :  { %v463_v45 = vadd.f32 %v456_v44, %v158_v42  ;;  %v458_v46 = vpop.f32.mrb[17].mxu0 }
 0x583   :  { %v464_v47 = vadd.f32 %v458_v46, %v160_v43  ;;  %v460_v48 = vpop.f32.mrb[18].mxu0 }
 0x584   :  { %v461_v49 = vpop.f32.mrb[19].mxu0  ;;  %v935_v51 = vmul.f32 -1.442695, %v463_v45  ;;  %v170_v48 = vadd.f32 %v1265_v28, %v1198_v20 }
 0x585   :  { %992 = vtanh.f32 %v464_v47  ;;  %v936_v61 = vmul.f32 -1.442695, %v464_v47  ;;  %v172_v49 = vadd.f32 %v1267_v29, %v1200_v21 }
 0x586   :  { %994 = vpow2.f32 %v935_v51 }
 0x58f   :  { %v993_v50 = vpop.eup %992 }
 0x590   :  { %480 = vrot.lane.b32.xlu0 %v993_v50, %s1090_s2  ;;  %v995_v52 = vpop.eup %994 }
 0x591   :  { %v471_v53 = vadd.f32 1.0, %v995_v52 }
 0x593   :  { %996 = vrcp.f32 %v471_v53 }
 0x59d   :  { %v997_v54 = vpop.eup %996 }
 0x59e   :  { %v478_v57 = vmul.f32 %v997_v54, %v408_v22 }
 0x602   :  { %v481_v55 = vpop.permute.xlu0 %480 }
 0x603   :  { %v483_v56 = vmul.f32 %v997_v54, %v481_v55 }
 0x605   :  { %485 = vrot.lane.b32.xlu1 %v483_v56, %s1090_s2 }
 0x677   :  { %v486_v58 = vpop.permute.xlu1 %485 }
 0x678   :  { %v488_v59 = vadd.f32 %v486_v58, %v478_v57 }
 0x67a   :  { %998 = vtanh.f32 %v488_v59 }
 0x67b   :  { %1000 = vpow2.f32 %v936_v61 }
 0x684   :  { %v999_v60 = vpop.eup %998 }
 0x685   :  { %491 = vrot.lane.b32.xlu0 %v999_v60, %s1090_s2  ;;  %v1001_v62 = vpop.eup %1000 }
 0x686   :  { %v472_v63 = vadd.f32 1.0, %v1001_v62 }
 0x688   :  { %1002 = vrcp.f32 %v472_v63 }
 0x692   :  { %v1003_v7 = vpop.eup %1002 }
 0x6f7   :  { %v492_v8 = vpop.permute.xlu0 %491 }
 0x6f8   :  { %v494_v9 = vmul.f32 %v1003_v7, %v492_v8 }
 0x6fa   :  { %v498_v13 = vpack.c.bf16 %v494_v9, %v494_v9 }
 0x6fc   :  { %937 = vmatmul.mubr.msk.bf16.vlgmr.msra.gmra.mrb[8].mxu1 %vm258_vm2, %v498_v13 }
 0x6fd   :  { %663 = vmatpush1.bf16.msra.mxu1 %v1125_v1  ;;  %694 = vmatprep.mubr.bf16.mxu1 %v1089_v4 }
 0x6fe   :  { %664 = vmatprep.subr.bf16.mxu1 %v1132_v3 }
 0x701   :  { %665 = vmatpush1.bf16.msra.mxu1 %v1139_v5 }
 0x702   :  { %666 = vmatprep.subr.bf16.mxu1 %v1144_v6 }
 0x705   :  { %667 = vmatpush1.bf16.msra.mxu1 %v1157_v10 }
 0x706   :  { %668 = vmatprep.subr.bf16.mxu1 %v1163_v11 }
 0x709   :  { %669 = vmatpush1.bf16.msra.mxu1 %v1173_v12 }
 0x70a   :  { %822 = vmatprep.subr.bf16.mxu1 %v1120_v0 }
 0x7cf   :  { %v536_v16 = vpop.f32.mrb[8].mxu1 }
 0x7d0   :  { %v543_v17 = vadd.f32 %v536_v16, %v164_v14  ;;  %v538_v18 = vpop.f32.mrb[9].mxu1 }
 0x7d1   :  { %v544_v19 = vadd.f32 %v538_v18, %v166_v15  ;;  %v540_v22 = vpop.f32.mrb[10].mxu1  ;;  %v176_v18 = vadd.f32 %v1269_v30, %v1198_v20 }
 0x7d2   :  { %v541_v23 = vpop.f32.mrb[11].mxu1  ;;  %v938_v25 = vmul.f32 -1.442695, %v543_v17 }
 0x7d3   :  { %1004 = vtanh.f32 %v544_v19  ;;  %v939_v41 = vmul.f32 -1.442695, %v544_v19 }
 0x7d4   :  { %1006 = vpow2.f32 %v938_v25 }
 0x7dd   :  { %v1005_v24 = vpop.eup %1004 }
 0x7de   :  { %560 = vrot.lane.b32.xlu1 %v1005_v24, %s1090_s2  ;;  %v1007_v26 = vpop.eup %1006 }
 0x7df   :  { %v551_v0 = vadd.f32 1.0, %v1007_v26 }
 0x7e1   :  { %1008 = vrcp.f32 %v551_v0 }
 0x7eb   :  { %v1009_v31 = vpop.eup %1008 }
 0x7ec   :  { %v558_v27 = vmul.f32 %v1009_v31, %v488_v59 }
 0x850   :  { %v561_v2 = vpop.permute.xlu1 %560 }
 0x851   :  { %v563_v33 = vmul.f32 %v1009_v31, %v561_v2 }
 0x853   :  { %565 = vrot.lane.b32.xlu0 %v563_v33, %s1090_s2 }
 0x8c5   :  { %v566_v38 = vpop.permute.xlu0 %565 }
 0x8c6   :  { %v568_v39 = vadd.f32 %v566_v38, %v558_v27 }
 0x8c8   :  { %1010 = vtanh.f32 %v568_v39 }
 0x8c9   :  { %1012 = vpow2.f32 %v939_v41 }
 0x8d2   :  { %v1011_v40 = vpop.eup %1010 }
 0x8d3   :  { %571 = vrot.lane.b32.xlu1 %v1011_v40, %s1090_s2  ;;  %v1013_v42 = vpop.eup %1012 }
 0x8d4   :  { %v552_v43 = vadd.f32 1.0, %v1013_v42  ;;  %v182_v42 = vadd.f32 %v1273_v34, %v1198_v20 }
 0x8d6   :  { %1014 = vrcp.f32 %v552_v43  ;;  %v184_v43 = vadd.f32 %v1275_v35, %v1200_v21 }
 0x8e0   :  { %v1015_v44 = vpop.eup %1014 }
 0x945   :  { %v572_v45 = vpop.permute.xlu1 %571 }
 0x946   :  { %v574_v46 = vmul.f32 %v1015_v44, %v572_v45 }
 0x948   :  { %v578_v47 = vpack.c.bf16 %v574_v46, %v574_v46 }
 0x94a   :  { %940 = vmatmul.mubr.msk.bf16.vlgmr.msra.gmra.mrb[20].mxu0 %vm258_vm2, %v578_v47 }
 0x94b   :  { %743 = vmatpush1.bf16.msra.mxu0 %v1125_v1  ;;  %774 = vmatprep.mubr.bf16.mxu0 %v1089_v4 }
 0x94c   :  { %744 = vmatprep.subr.bf16.mxu0 %v1132_v3 }
 0x94f   :  { %745 = vmatpush1.bf16.msra.mxu0 %v1139_v5 }
 0x950   :  { %746 = vmatprep.subr.bf16.mxu0 %v1144_v6 }
 0x953   :  { %747 = vmatpush1.bf16.msra.mxu0 %v1157_v10 }
 0x954   :  { %748 = vmatprep.subr.bf16.mxu0 %v1163_v11 }
 0x957   :  { %749 = vmatpush1.bf16.msra.mxu0 %v1173_v12 }
 0xa1d   :  { %v616_v50 = vpop.f32.mrb[20].mxu0 }
 0xa1e   :  { %v623_v51 = vadd.f32 %v616_v50, %v170_v48  ;;  %v618_v52 = vpop.f32.mrb[21].mxu0 }
 0xa1f   :  { %v624_v53 = vadd.f32 %v618_v52, %v172_v49  ;;  %v620_v54 = vpop.f32.mrb[22].mxu0 }
 0xa20   :  { %v621_v55 = vpop.f32.mrb[23].mxu0  ;;  %v941_v57 = vmul.f32 -1.442695, %v623_v51 }
 0xa21   :  { %1016 = vtanh.f32 %v624_v53  ;;  %v942_v8 = vmul.f32 -1.442695, %v624_v53 }
 0xa22   :  { %1018 = vpow2.f32 %v941_v57 }
 0xa2b   :  { %v1017_v56 = vpop.eup %1016 }
 0xa2c   :  { %640 = vrot.lane.b32.xlu0 %v1017_v56, %s1090_s2  ;;  %v1019_v58 = vpop.eup %1018 }
 0xa2d   :  { %v631_v59 = vadd.f32 1.0, %v1019_v58 }
 0xa2f   :  { %1020 = vrcp.f32 %v631_v59 }
 0xa39   :  { %v1021_v60 = vpop.eup %1020 }
 0xa3a   :  { %v638_v29 = vmul.f32 %v1021_v60, %v568_v39 }
 0xa9e   :  { %v641_v28 = vpop.permute.xlu0 %640 }
 0xa9f   :  { %v643_v61 = vmul.f32 %v1021_v60, %v641_v28 }
 0xaa1   :  { %645 = vrot.lane.b32.xlu1 %v643_v61, %s1090_s2 }
 0xb13   :  { %v646_v62 = vpop.permute.xlu1 %645 }
 0xb14   :  { %v648_v63 = vadd.f32 %v646_v62, %v638_v29 }
 0xb16   :  { %1022 = vtanh.f32 %v648_v63 }
 0xb17   :  { %1024 = vpow2.f32 %v942_v8  ;;  %v190_v8 = vadd.f32 %v1279_v37, %v1200_v21 }
 0xb20   :  { %v1023_v7 = vpop.eup %1022 }
 0xb21   :  { %651 = vrot.lane.b32.xlu0 %v1023_v7, %s1090_s2  ;;  %v1025_v9 = vpop.eup %1024  ;;  %v188_v7 = vadd.f32 %v1277_v36, %v1198_v20 }
 0xb22   :  { %v632_v13 = vadd.f32 1.0, %v1025_v9 }
 0xb24   :  { %1026 = vrcp.f32 %v632_v13 }
 0xb2e   :  { %v1027_v14 = vpop.eup %1026 }
 0xb93   :  { %v652_v15 = vpop.permute.xlu0 %651 }
 0xb94   :  { %v654_v16 = vmul.f32 %v1027_v14, %v652_v15 }
 0xb96   :  { %v658_v17 = vpack.c.bf16 %v654_v16, %v654_v16 }
 0xb98   :  { %943 = vmatmul.mubr.msk.bf16.vlgmr.msra.gmra.mrb[12].mxu1 %vm258_vm2, %v658_v17 }
 0xb99   :  { %823 = vmatpush1.bf16.msra.mxu1 %v1125_v1  ;;  %854 = vmatprep.mubr.bf16.mxu1 %v1089_v4  ;;  %v178_v1 = vadd.f32 %v1271_v32, %v1200_v21 }
 0xb9a   :  { %824 = vmatprep.subr.bf16.mxu1 %v1132_v3 }
 0xb9d   :  { %825 = vmatpush1.bf16.msra.mxu1 %v1139_v5 }
 0xb9e   :  { %826 = vmatprep.subr.bf16.mxu1 %v1144_v6 }
 0xba1   :  { %827 = vmatpush1.bf16.msra.mxu1 %v1157_v10 }
 0xba2   :  { %828 = vmatprep.subr.bf16.mxu1 %v1163_v11 }
 0xba5   :  { %829 = vmatpush1.bf16.msra.mxu1 %v1173_v12 }
 0xc6b   :  { %v696_v19 = vpop.f32.mrb[12].mxu1 }
 0xc6c   :  { %v703_v4 = vadd.f32 %v696_v19, %v176_v18  ;;  %v698_v22 = vpop.f32.mrb[13].mxu1 }
 0xc6d   :  { %v704_v3 = vadd.f32 %v698_v22, %v178_v1  ;;  %v700_v23 = vpop.f32.mrb[14].mxu1 }
 0xc6e   :  { %v701_v5 = vpop.f32.mrb[15].mxu1  ;;  %v944_v10 = vmul.f32 -1.442695, %v703_v4 }
 0xc6f   :  { %1028 = vtanh.f32 %v704_v3  ;;  %v945_v2 = vmul.f32 -1.442695, %v704_v3 }
 0xc70   :  { %1030 = vpow2.f32 %v944_v10 }
 0xc79   :  { %v1029_v6 = vpop.eup %1028 }
 0xc7a   :  { %720 = vrot.lane.b32.xlu1 %v1029_v6, %s1090_s2  ;;  %v1031_v11 = vpop.eup %1030 }
 0xc7b   :  { %v711_v12 = vadd.f32 1.0, %v1031_v11 }
 0xc7d   :  { %1032 = vrcp.f32 %v711_v12 }
 0xc87   :  { %v1033_v24 = vpop.eup %1032 }
 0xc88   :  { %v718_v32 = vmul.f32 %v1033_v24, %v648_v63 }
 0xcec   :  { %v721_v30 = vpop.permute.xlu1 %720 }
 0xced   :  { %v723_v25 = vmul.f32 %v1033_v24, %v721_v30 }
 0xcef   :  { %725 = vrot.lane.b32.xlu0 %v723_v25, %s1090_s2 }
 0xd61   :  { %v726_v26 = vpop.permute.xlu0 %725 }
 0xd62   :  { %v728_v0 = vadd.f32 %v726_v26, %v718_v32 }
 0xd64   :  { %1034 = vtanh.f32 %v728_v0 }
 0xd65   :  { %1036 = vpow2.f32 %v945_v2 }
 0xd6e   :  { %v1035_v31 = vpop.eup %1034 }
 0xd6f   :  { %731 = vrot.lane.b32.xlu1 %v1035_v31, %s1090_s2  ;;  %v1037_v33 = vpop.eup %1036 }
 0xd70   :  { %v712_v27 = vadd.f32 1.0, %v1037_v33 }
 0xd72   :  { %1038 = vrcp.f32 %v712_v27 }
 0xd7c   :  { %v1039_v38 = vpop.eup %1038 }
 0xde1   :  { %v732_v39 = vpop.permute.xlu1 %731 }
 0xde2   :  { %v734_v40 = vmul.f32 %v1039_v38, %v732_v39 }
 0xde4   :  { %v738_v41 = vpack.c.bf16 %v734_v40, %v734_v40 }
 0xde6   :  { %946 = vmatmul.mubr.msk.bf16.vlgmr.msra.gmra.mrb[24].mxu0 %vm258_vm2, %v738_v41 }
 0xeb9   :  { %v776_v44 = vpop.f32.mrb[24].mxu0 }
 0xeba   :  { %v783_v45 = vadd.f32 %v776_v44, %v182_v42  ;;  %v778_v46 = vpop.f32.mrb[25].mxu0 }
 0xebb   :  { %v784_v47 = vadd.f32 %v778_v46, %v184_v43  ;;  %v780_v48 = vpop.f32.mrb[26].mxu0 }
 0xebc   :  { %v781_v49 = vpop.f32.mrb[27].mxu0  ;;  %v947_v51 = vmul.f32 -1.442695, %v783_v45 }
 0xebd   :  { %1040 = vtanh.f32 %v784_v47  ;;  %v948_v59 = vmul.f32 -1.442695, %v784_v47 }
 0xebe   :  { %1042 = vpow2.f32 %v947_v51 }
 0xec7   :  { %v1041_v50 = vpop.eup %1040 }
 0xec8   :  { %800 = vrot.lane.b32.xlu0 %v1041_v50, %s1090_s2  ;;  %v1043_v52 = vpop.eup %1042 }
 0xec9   :  { %v791_v53 = vadd.f32 1.0, %v1043_v52 }
 0xecb   :  { %1044 = vrcp.f32 %v791_v53 }
 0xed5   :  { %v1045_v54 = vpop.eup %1044 }
 0xed6   :  { %v798_v35 = vmul.f32 %v1045_v54, %v728_v0 }
 0xf3a   :  { %v801_v34 = vpop.permute.xlu0 %800 }
 0xf3b   :  { %v803_v55 = vmul.f32 %v1045_v54, %v801_v34 }
 0xf3d   :  { %805 = vrot.lane.b32.xlu1 %v803_v55, %s1090_s2 }
 0xfaf   :  { %v806_v56 = vpop.permute.xlu1 %805 }
 0xfb0   :  { %v808_v57 = vadd.f32 %v806_v56, %v798_v35 }
 0xfb2   :  { %1046 = vtanh.f32 %v808_v57 }
 0xfb3   :  { %1048 = vpow2.f32 %v948_v59 }
 0xfbc   :  { %v1047_v58 = vpop.eup %1046 }
 0xfbd   :  { %811 = vrot.lane.b32.xlu0 %v1047_v58, %s1090_s2  ;;  %v1049_v60 = vpop.eup %1048 }
 0xfbe   :  { %v792_v28 = vadd.f32 1.0, %v1049_v60 }
 0xfc0   :  { %1050 = vrcp.f32 %v792_v28 }
 0xfca   :  { %v1051_v61 = vpop.eup %1050 }
0x102f   :  { %v812_v29 = vpop.permute.xlu0 %811 }
0x1030   :  { %v814_v62 = vmul.f32 %v1051_v61, %v812_v29 }
0x1032   :  { %v818_v63 = vpack.c.bf16 %v814_v62, %v814_v62 }
0x1034   :  { %949 = vmatmul.mubr.msk.bf16.vlgmr.msra.gmra.mrb[16].mxu1 %vm258_vm2, %v818_v63 }
0x1107   :  { %v856_v9 = vpop.f32.mrb[16].mxu1 }
0x1108   :  { %v863_v13 = vadd.f32 %v856_v9, %v188_v7  ;;  %v858_v14 = vpop.f32.mrb[17].mxu1 }
0x1109   :  { %v864_v15 = vadd.f32 %v858_v14, %v190_v8  ;;  %v860_v16 = vpop.f32.mrb[18].mxu1 }
0x110a   :  { %v861_v17 = vpop.f32.mrb[19].mxu1  ;;  %v950_v1 = vmul.f32 -1.442695, %v863_v13 }
0x110b   :  { %1052 = vtanh.f32 %v864_v15  ;;  %v951_v5 = vmul.f32 -1.442695, %v864_v15 }
0x110c   :  { %1054 = vpow2.f32 %v950_v1 }
0x1115   :  { %v1053_v18 = vpop.eup %1052 }
0x1116   :  { %880 = vrot.lane.b32.xlu1 %v1053_v18, %s1090_s2  ;;  %v1055_v19 = vpop.eup %1054 }
0x1117   :  { %v871_v4 = vadd.f32 1.0, %v1055_v19 }
0x1119   :  { %1056 = vrcp.f32 %v871_v4 }
0x1123   :  { %v1057_v22 = vpop.eup %1056 }
0x1124   :  { %v878_v21 = vmul.f32 %v1057_v22, %v808_v57 }
0x1188   :  { %v881_v20 = vpop.permute.xlu1 %880 }
0x1189   :  { %v883_v36 = vmul.f32 %v1057_v22, %v881_v20 }
0x118b   :  { %885 = vrot.lane.b32.xlu0 %v883_v36, %s1090_s2 }
0x11fd   :  { %v886_v37 = vpop.permute.xlu0 %885 }
0x11fe   :  { %v888_v3 = vadd.f32 %v886_v37, %v878_v21 }
0x1200   :  { %1058 = vtanh.f32 %v888_v3 }
0x1201   :  { %1060 = vpow2.f32 %v951_v5 }
0x120a   :  { %v1059_v23 = vpop.eup %1058 }
0x120b   :  { %891 = vrot.lane.b32.xlu1 %v1059_v23, %s1090_s2  ;;  %v1061_v6 = vpop.eup %1060 }
0x120c   :  { %v872_v10 = vadd.f32 1.0, %v1061_v6 }
0x120e   :  { %1062 = vrcp.f32 %v872_v10 }
0x1218   :  { %v1063_v11 = vpop.eup %1062 }
0x127d   :  { %v892_v12 = vpop.permute.xlu1 %891 }
0x127e   :  { %v894_v24 = vmul.f32 %v1063_v11, %v892_v12 }
0x1280   :  { %895 = vst.msk [vmem:[#allocation3] sm:$0xff] %vm258_vm2, %v894_v24 }
0x1281   :  { %1075 = shalt.err (!%p1072_p4)
}
0x1282   :  { %s1076_s27 = scalar_lea.hbm %s1378_s4, 128 }
0x1283   :  { %p1077_p5 = scmp.ne.s32.totalorder %s1378_s4, %s1076_s27  ;;  %p1080_p6 = scmp.lt.u32.totalorder %s1076_s27, %s1378_s4 }
0x1285   :  { %p1082_p7 = pnand %p1080_p6, %p1077_p5 }
0x1287   :  { %1085 = shalt.err (!%p1082_p7)
}
0x1288   :  { %905 = dma.vmem_to_hbm [thread:$0]  %s903_s23, 128, %s1378_s4, [#allocation4]  }
0x1289   :  { %1086 = dma.done.wait [#allocation4], 128  }
0x128a   :  { %1087 = vsyncadd [#allocation4], 4294967168 }
0x128b   :  { %909 = vsyncpa [#allocation4], 1 }

</bundles_post_ra>
